<compile_context>
chip_gen: v5e
topology: v5e:2x2
jax: 0.10.0
libtpu: 0.0.40
codegen_flags: <defaults>
</compile_context>

<pallas_src>
import functools

import jax
import jax.numpy as jnp
from jax.experimental import pallas as pl
from jax.experimental.pallas import tpu as pltpu


def _round_up(x, m):
    return ((x + m - 1) // m) * m


def _choose_tiling(size):
    """Pick (padded_size, tn, tk) for a square `size x size` weight.

    Big tiles keep the grid-step count tiny (per-step overhead ~0.35us) and
    keep the weight DMA streaming near the HBM roofline, while staying well
    under v7x's 64 MiB VMEM.  For the real 6000x6000 layers this gives
    padded=6144, tn=2048, tk=2048 -> 9 grid steps per layer, ~16.5 MiB of
    double-buffered VMEM.
    """
    pad128 = _round_up(size, 128)
    tn, padded = 128, pad128
    # Largest lane tile whose padding overhead stays below ~5%.
    for base in (2048, 1024, 512, 256):
        p = _round_up(size, base)
        if p <= int(pad128 * 1.05) + 1:
            tn, padded = base, p
            break
    tk = tn
    for cand in (4096, 2048):
        if cand > tn and padded % cand == 0:
            tk = cand
            break
    return padded, tn, tk


def linear_kernel(x_ref, w_ref, b_ref, o_ref, acc_ref):
    """One (tm, tn) output tile; reduces over K on the last grid axis.

    The f32 accumulator is initialised with the (broadcast) bias on the first
    K step, so the epilogue is just a cast-and-store.
    """
    k = pl.program_id(2)

    @pl.when(k == 0)
    def _():
        acc_ref[...] = jnp.broadcast_to(b_ref[...], acc_ref.shape)

    acc_ref[...] += jnp.dot(
        x_ref[...], w_ref[...], preferred_element_type=jnp.float32
    )

    @pl.when(k == pl.num_programs(2) - 1)
    def _():
        o_ref[...] = acc_ref[...].astype(o_ref.dtype)


@functools.partial(jax.jit, static_argnames=("tm", "tn", "tk"))
def pallas_linear(x, w_t, b, *, tm, tn, tk):
    """y = x @ w_t + b.  All dims must already be padded to tile multiples."""
    M, K = x.shape
    Kw, N = w_t.shape
    assert K == Kw and b.shape == (N,)
    assert M % tm == 0 and N % tn == 0 and K % tk == 0

    out_dtype = x.dtype
    x = x.astype(w_t.dtype)                  # bf16 activations feed the MXU
    b2 = b.reshape(1, N).astype(jnp.float32)

    grid = (M // tm, N // tn, K // tk)
    return pl.pallas_call(
        linear_kernel,
        out_shape=jax.ShapeDtypeStruct((M, N), out_dtype),
        grid_spec=pltpu.PrefetchScalarGridSpec(
            num_scalar_prefetch=0,
            grid=grid,
            in_specs=[
                pl.BlockSpec((tm, tk), lambda i, j, k: (i, k)),  # x tile
                pl.BlockSpec((tk, tn), lambda i, j, k: (k, j)),  # streamed W^T
                pl.BlockSpec((1, tn), lambda i, j, k: (0, j)),   # bias
            ],
            out_specs=pl.BlockSpec((tm, tn), lambda i, j, k: (i, j)),
            scratch_shapes=[pltpu.VMEM((tm, tn), jnp.float32)],
        ),
        compiler_params=pltpu.CompilerParams(
            dimension_semantics=("parallel", "parallel", "arbitrary"),
            # Big-tile config (2048x2048 bf16 weight tiles, double-buffered)
            # needs ~17 MiB; 48 MiB headroom is safe on v5e/v6e/v7x.
            vmem_limit_bytes=48 * 1024 * 1024,
        ),
    )(x, w_t, b2)


def init_linear_params(key, in_features, out_features, k_pad, n_pad,
                       weight_dtype=jnp.bfloat16):
    """nn.Linear-style uniform(-1/sqrt(in), 1/sqrt(in)) init.

    Returns (padded bf16 W^T, padded f32 bias) for the kernel plus the
    unpadded f32 originals for the reference check.
    """
    kw, kb = jax.random.split(key)
    bound = 1.0 / float(in_features) ** 0.5
    w_t = jax.random.uniform(kw, (in_features, out_features), jnp.float32,
                             -bound, bound)
    b = jax.random.uniform(kb, (out_features,), jnp.float32, -bound, bound)
    w_t_padded = (
        jnp.zeros((k_pad, n_pad), weight_dtype)
        .at[:in_features, :out_features]
        .set(w_t.astype(weight_dtype))
    )
    b_padded = jnp.zeros((n_pad,), jnp.float32).at[:out_features].set(b)
    return (w_t_padded, b_padded), (w_t, b)


class PallasModel:
    """JAX/Pallas port of the PyTorch Model: 7 chained Linear layers
    (fc, fc2..fc7; fc1 is instantiated for parameter parity but is unused in
    forward, exactly like the original)."""

    FORWARD = ("fc", "fc2", "fc3", "fc4", "fc5", "fc6", "fc7")
    ALL = ("fc", "fc1", "fc2", "fc3", "fc4", "fc5", "fc6", "fc7")

    def __init__(self, input_size, output_size, key,
                 weight_dtype=jnp.bfloat16):
        assert input_size == output_size, "layers chain, so sizes must match"
        self.size = input_size
        # TODO(synk): on v7x, weight_dtype could be an fp8 type (with f32
        # accumulation) for another ~2x HBM-bandwidth win if accuracy allows.
        self.padded, self.tn, self.tk = _choose_tiling(input_size)
        keys = jax.random.split(key, len(self.ALL))
        self.params, self.params_ref = {}, {}
        for name, k in zip(self.ALL, keys):
            padded, ref = init_linear_params(
                k, input_size, output_size, self.padded, self.padded,
                weight_dtype)
            self.params[name] = padded
            self.params_ref[name] = ref

    def __call__(self, x):
        M, K = x.shape
        assert K == self.size
        # Keep tm == (padded) batch: MXU underfill is fine, the workload is
        # weight-bandwidth bound.  Pad K/N once and keep intermediates padded.
        tm = min(_round_up(M, 8), 256)
        m_pad = _round_up(M, tm)
        out = jnp.zeros((m_pad, self.padded), x.dtype).at[:M, :K].set(x)
        for name in self.FORWARD:
            w_t, b = self.params[name]
            out = pallas_linear(out, w_t, b, tm=tm, tn=self.tn, tk=self.tk)
        out = out[:M, : self.size]
        print("\tIn Model: input size", x.shape, "output size", out.shape)
        return out


if __name__ == "__main__":
    # Small shapes consistent with the module (stands in for 6000x6000).
    batch = 8
    hidden = 256

    key = jax.random.PRNGKey(0)
    k_model, k_x = jax.random.split(key)

    model = PallasModel(hidden, hidden, k_model)
    x = jax.random.normal(k_x, (batch, hidden), dtype=jnp.float32)

    out = model(x)
    jax.block_until_ready(out)

    # Reference: same bf16-quantized weights/activations, f32 accumulation.
    ref = x
    for name in PallasModel.FORWARD:
        w_t, b = model.params_ref[name]
        a_q = ref.astype(jnp.bfloat16).astype(jnp.float32)
        w_q = w_t.astype(jnp.bfloat16).astype(jnp.float32)
        ref = a_q @ w_q + b
    assert out.shape == (batch, hidden)
    assert jnp.allclose(out, ref, atol=2e-2, rtol=2e-2), float(
        jnp.max(jnp.abs(out - ref)))

    print("KERNEL_OK")
</pallas_src>

<mosaic_0001>
module attributes {stable_mosaic.version = 11 : i64} {
  func.func @linear_kernel(%arg0: i32, %arg1: i32, %arg2: i32, %arg3: memref<8x256xbf16, #tpu.memory_space<vmem>>, %arg4: memref<256x256xbf16, #tpu.memory_space<vmem>>, %arg5: memref<1x256xf32, #tpu.memory_space<vmem>>, %arg6: memref<8x256xf32, #tpu.memory_space<vmem>>, %arg7: memref<8x256xf32, #tpu.memory_space<vmem>>) attributes {dimension_semantics = [#tpu.dimension_semantics<parallel>, #tpu.dimension_semantics<parallel>, #tpu.dimension_semantics<arbitrary>], iteration_bounds = array<i64: 1, 1, 1>, scalar_prefetch = 0 : i64, scratch_operands = 1 : i64, tpu.core_type = #tpu.core_type<tc>, window_params = [{transform_indices = @transform_0, window_bounds = array<i64: 8, 256>}, {transform_indices = @transform_1, window_bounds = array<i64: 256, 256>}, {transform_indices = @transform_2, window_bounds = array<i64: 1, 256>}, {transform_indices = @transform_3, window_bounds = array<i64: 8, 256>}]} {
    %c0_i32 = arith.constant 0 : i32
    %0 = arith.cmpi eq, %arg2, %c0_i32 : i32
    %1 = arith.extui %0 : i1 to i32
    %c0_i32_0 = arith.constant 0 : i32
    %2 = arith.cmpi ne, %1, %c0_i32_0 : i32
    scf.if %2 {
      %c0_10 = arith.constant 0 : index
      %c0_11 = arith.constant 0 : index
      %12 = vector.load %arg5[%c0_10, %c0_11] : memref<1x256xf32, #tpu.memory_space<vmem>>, vector<1x256xf32>
      %13 = vector.shape_cast %12 : vector<1x256xf32> to vector<1x256xf32>
      %14 = vector.broadcast %13 : vector<1x256xf32> to vector<8x256xf32>
      %c0_12 = arith.constant 0 : index
      %c0_13 = arith.constant 0 : index
      %15 = vector.load %arg7[%c0_12, %c0_13] : memref<8x256xf32, #tpu.memory_space<vmem>>, vector<8x256xf32>
      tpu.vector_store %arg7[%c0_12, %c0_13], %14 {strides = array<i32>} : memref<8x256xf32, #tpu.memory_space<vmem>>, vector<8x256xf32>,
    } else {
    }
    %c0 = arith.constant 0 : index
    %c0_1 = arith.constant 0 : index
    %3 = vector.load %arg7[%c0, %c0_1] : memref<8x256xf32, #tpu.memory_space<vmem>>, vector<8x256xf32>
    %c0_2 = arith.constant 0 : index
    %c0_3 = arith.constant 0 : index
    %4 = vector.load %arg3[%c0_2, %c0_3] : memref<8x256xbf16, #tpu.memory_space<vmem>>, vector<8x256xbf16>
    %c0_4 = arith.constant 0 : index
    %c0_5 = arith.constant 0 : index
    %5 = vector.load %arg4[%c0_4, %c0_5] : memref<256x256xbf16, #tpu.memory_space<vmem>>, vector<256x256xbf16>
    %cst = arith.constant dense<0.000000e+00> : vector<8x256xf32>
    %6 = tpu.matmul %4, %5, %cst {dimension_numbers = #tpu.dot_dimension_numbers<[1], [0], [0], [1], [0, 0, 1, 1], [], []>} : vector<8x256xbf16>, vector<256x256xbf16>, vector<8x256xf32> -> vector<8x256xf32>
    %7 = arith.addf %3, %6 : vector<8x256xf32>
    %c0_6 = arith.constant 0 : index
    %c0_7 = arith.constant 0 : index
    %8 = vector.load %arg7[%c0_6, %c0_7] : memref<8x256xf32, #tpu.memory_space<vmem>>, vector<8x256xf32>
    tpu.vector_store %arg7[%c0_6, %c0_7], %7 {strides = array<i32>} : memref<8x256xf32, #tpu.memory_space<vmem>>, vector<8x256xf32>,
    %c0_i32_8 = arith.constant 0 : i32
    %9 = arith.cmpi eq, %arg2, %c0_i32_8 : i32
    %10 = arith.extui %9 : i1 to i32
    %c0_i32_9 = arith.constant 0 : i32
    %11 = arith.cmpi ne, %10, %c0_i32_9 : i32
    scf.if %11 {
      %c0_10 = arith.constant 0 : index
      %c0_11 = arith.constant 0 : index
      %12 = vector.load %arg7[%c0_10, %c0_11] : memref<8x256xf32, #tpu.memory_space<vmem>>, vector<8x256xf32>
      %c0_12 = arith.constant 0 : index
      %c0_13 = arith.constant 0 : index
      %13 = vector.load %arg6[%c0_12, %c0_13] : memref<8x256xf32, #tpu.memory_space<vmem>>, vector<8x256xf32>
      tpu.vector_store %arg6[%c0_12, %c0_13], %12 {strides = array<i32>} : memref<8x256xf32, #tpu.memory_space<vmem>>, vector<8x256xf32>,
    } else {
    }
    return
  }
  func.func @transform_0(%arg0: i32, %arg1: i32, %arg2: i32) -> (i32, i32) {
    %c0_i32 = arith.constant 0 : i32
    return %arg0, %arg2 : i32, i32
  }
  func.func @transform_1(%arg0: i32, %arg1: i32, %arg2: i32) -> (i32, i32) {
    %c0_i32 = arith.constant 0 : i32
    return %arg2, %arg1 : i32, i32
  }
  func.func @transform_2(%arg0: i32, %arg1: i32, %arg2: i32) -> (i32, i32) {
    %c0_i32 = arith.constant 0 : i32
    %c0_i32_0 = arith.constant 0 : i32
    return %c0_i32, %arg1 : i32, i32
  }
  func.func @transform_3(%arg0: i32, %arg1: i32, %arg2: i32) -> (i32, i32) {
    %c0_i32 = arith.constant 0 : i32
    return %arg0, %arg1 : i32, i32
  }
}

</mosaic_0001>

<bundles_post_ra>
// kernel: pallas_linear.1
= control target key start
LH: loop header
LB: loop body
LE: loop exit
PB: predicated region body
PF: predicated region fallthrough
CT: control target
= control target key end

     0   :  { %8 = vsyncpa [#allocation4], 0  ;;  %s577_s0 = inlined_call_operand.vmem [shape: bf16[8,256], index: 0, kind: input, shape index: {}]   ;;  %s578_s1 = inlined_call_operand.hbm [shape: bf16[256,256], index: 1, kind: input, shape index: {}]   ;;  %s579_s2 = inlined_call_operand.vmem [shape: f32[1,256], index: 2, kind: input, shape index: {}]   ;;  %s580_s3 = inlined_call_operand.hbm [shape: f32[8,256], index: 3, kind: output, shape index: {}]  }
   0x1   :  { %9 = vsyncpa [#allocation5], 0  ;;  %s16_s14 = sshll.u32 %s578_s1, 4  ;;  %s541_s15 = smov [#allocation3]   ;;  %s17_s14 = int_to_ptr.hbm [resolvable:$true] %s16_s14 }
   0x2   :  { %s18_s16 = sshll.u32 %s541_s15, 4  ;;  %s542_s17 = smov 128   ;;  %s19_s16 = int_to_ptr.vmem [resolvable:$true] %s18_s16 }
   0x3   :  { %s543_s18 = smov 8  }
   0x4   :  { %24 = dma.hbm_to_vmem [thread:$0]  %s17_s14, 4096, %s19_s16, [#allocation4], %s542_s17, %s542_s17, %s543_s18  }
   0x5   :  { %537 = dma.done.wait [#allocation4], 4096  }
   0x6   :  { %538 = vsyncadd [#allocation4], 4294963200  ;;  %v383_v0 = vld [vmem:[#allocation3 + $0x70] sm:$0xf]  ;;  %v468_v1 = vld [vmem:[#allocation3 + $0x74] sm:$0xf0] }
   0x7   :  { %v447_v2 = vld [vmem:[#allocation3 + $0xf0] sm:$0xf]  ;;  %v384_v3 = vor.u32 %v468_v1, %v383_v0  ;;  %v484_v4 = vld [vmem:[#allocation3 + $0xf4] sm:$0xf0]  ;;  %v467_v5 = vld [vmem:[#allocation3 + $0x74] sm:$0xf] }
   0x8   :  { %v385_v6 = vld [vmem:[#allocation3 + $0x78] sm:$0xf0]  ;;  %v448_v7 = vor.u32 %v484_v4, %v447_v2  ;;  %v483_v9 = vld [vmem:[#allocation3 + $0xf4] sm:$0xf]  ;;  %v375_v11 = vld [vmem:[#allocation3 + $0x60] sm:$0xf] }
   0x9   :  { %v388_v8 = vor.u32 %v467_v5, %v385_v6  ;;  %v449_v10 = vld [vmem:[#allocation3 + $0xf8] sm:$0xf0]  ;;  %245 = vmatpush.bf16.msra.mxu0 %v384_v3  ;;  %v466_v13 = vld [vmem:[#allocation3 + $0x64] sm:$0xf0]  ;;  %v439_v14 = vld [vmem:[#allocation3 + $0xe0] sm:$0xf] }
   0xa   :  { %v452_v12 = vor.u32 %v483_v9, %v449_v10  ;;  %v482_v15 = vld [vmem:[#allocation3 + $0xe4] sm:$0xf0]  ;;  %258 = vmatpush.bf16.msra.mxu1 %v448_v7  ;;  %v376_v16 = vor.u32 %v466_v13, %v375_v11  ;;  %v465_v18 = vld [vmem:[#allocation3 + $0x64] sm:$0xf]  ;;  %v377_v19 = vld [vmem:[#allocation3 + $0x68] sm:$0xf0] }
   0xb   :  { %271 = vmatpush.bf16.msra.mxu2 %v388_v8  ;;  %v440_v17 = vor.u32 %v482_v15, %v439_v14  ;;  %v481_v20 = vld [vmem:[#allocation3 + $0xe4] sm:$0xf]  ;;  %v380_v21 = vor.u32 %v465_v18, %v377_v19  ;;  %v441_v22 = vld [vmem:[#allocation3 + $0xe8] sm:$0xf0]  ;;  %v367_v23 = vld [vmem:[#allocation3 + $0x50] sm:$0xf] }
   0xc   :  { %284 = vmatpush.bf16.msra.mxu3 %v452_v12  ;;  %v464_v24 = vld [vmem:[#allocation3 + $0x54] sm:$0xf0]  ;;  %v444_v25 = vor.u32 %v481_v20, %v441_v22  ;;  %v431_v26 = vld [vmem:[#allocation3 + $0xd0] sm:$0xf]  ;;  %v463_v28 = vld [vmem:[#allocation3 + $0x54] sm:$0xf] }
   0xd   :  { %v480_v27 = vld [vmem:[#allocation3 + $0xd4] sm:$0xf0]  ;;  %246 = vmatpush.bf16.msra.mxu0 %v376_v16  ;;  %v368_v29 = vor.u32 %v464_v24, %v367_v23  ;;  %v369_v30 = vld [vmem:[#allocation3 + $0x58] sm:$0xf0]  ;;  %v479_v31 = vld [vmem:[#allocation3 + $0xd4] sm:$0xf] }
   0xe   :  { %v433_v32 = vld [vmem:[#allocation3 + $0xd8] sm:$0xf0]  ;;  %259 = vmatpush.bf16.msra.mxu1 %v440_v17  ;;  %v432_v33 = vor.u32 %v480_v27, %v431_v26  ;;  %v372_v34 = vor.u32 %v463_v28, %v369_v30  ;;  %v359_v35 = vld [vmem:[#allocation3 + $0x40] sm:$0xf]  ;;  %v462_v36 = vld [vmem:[#allocation3 + $0x44] sm:$0xf0] }
   0xf   :  { %272 = vmatpush.bf16.msra.mxu2 %v380_v21  ;;  %v423_v37 = vld [vmem:[#allocation3 + $0xc0] sm:$0xf]  ;;  %v436_v38 = vor.u32 %v479_v31, %v433_v32  ;;  %v478_v39 = vld [vmem:[#allocation3 + $0xc4] sm:$0xf0]  ;;  %v461_v40 = vld [vmem:[#allocation3 + $0x44] sm:$0xf]  ;;  %v360_v44 = vor.u32 %v462_v36, %v359_v35 }
  0x10   :  { %285 = vmatpush.bf16.msra.mxu3 %v444_v25  ;;  %v361_v41 = vld [vmem:[#allocation3 + $0x48] sm:$0xf0]  ;;  %v477_v42 = vld [vmem:[#allocation3 + $0xc4] sm:$0xf]  ;;  %v424_v45 = vor.u32 %v478_v39, %v423_v37  ;;  %v351_v47 = vld [vmem:[#allocation3 + $0x30] sm:$0xf] }
  0x11   :  { %v425_v43 = vld [vmem:[#allocation3 + $0xc8] sm:$0xf0]  ;;  %247 = vmatpush.bf16.msra.mxu0 %v368_v29  ;;  %v364_v46 = vor.u32 %v461_v40, %v361_v41  ;;  %v460_v48 = vld [vmem:[#allocation3 + $0x34] sm:$0xf0]  ;;  %v415_v49 = vld [vmem:[#allocation3 + $0xb0] sm:$0xf] }
  0x12   :  { %260 = vmatpush.bf16.msra.mxu1 %v432_v33  ;;  %v428_v50 = vor.u32 %v477_v42, %v425_v43  ;;  %v476_v51 = vld [vmem:[#allocation3 + $0xb4] sm:$0xf0]  ;;  %v459_v52 = vld [vmem:[#allocation3 + $0x34] sm:$0xf]  ;;  %v353_v53 = vld [vmem:[#allocation3 + $0x38] sm:$0xf0]  ;;  %v352_v56 = vor.u32 %v460_v48, %v351_v47 }
  0x13   :  { %273 = vmatpush.bf16.msra.mxu2 %v372_v34  ;;  %v475_v54 = vld [vmem:[#allocation3 + $0xb4] sm:$0xf]  ;;  %v417_v55 = vld [vmem:[#allocation3 + $0xb8] sm:$0xf0]  ;;  %v416_v57 = vor.u32 %v476_v51, %v415_v49  ;;  %v356_v58 = vor.u32 %v459_v52, %v353_v53  ;;  %v343_v59 = vld [vmem:[#allocation3 + $0x20] sm:$0xf] }
  0x14   :  { %286 = vmatpush.bf16.msra.mxu3 %v436_v38  ;;  %v458_v60 = vld [vmem:[#allocation3 + $0x24] sm:$0xf0]  ;;  %v407_v61 = vld [vmem:[#allocation3 + $0xa0] sm:$0xf]  ;;  %v420_v62 = vor.u32 %v475_v54, %v417_v55  ;;  %v457_v0 = vld [vmem:[#allocation3 + $0x24] sm:$0xf] }
  0x15   :  { %248 = vmatpush.bf16.msra.mxu0 %v360_v44  ;;  %v474_v63 = vld [vmem:[#allocation3 + $0xa4] sm:$0xf0]  ;;  %v345_v1 = vld [vmem:[#allocation3 + $0x28] sm:$0xf0]  ;;  %v473_v2 = vld [vmem:[#allocation3 + $0xa4] sm:$0xf]  ;;  %v344_v4 = vor.u32 %v458_v60, %v343_v59 }
  0x16   :  { %261 = vmatpush.bf16.msra.mxu1 %v424_v45  ;;  %v409_v3 = vld [vmem:[#allocation3 + $0xa8] sm:$0xf0]  ;;  %v408_v5 = vor.u32 %v474_v63, %v407_v61  ;;  %v348_v6 = vor.u32 %v457_v0, %v345_v1  ;;  %v335_v7 = vld [vmem:[#allocation3 + $0x10] sm:$0xf]  ;;  %v456_v8 = vld [vmem:[#allocation3 + $0x14] sm:$0xf0] }
  0x17   :  { %274 = vmatpush.bf16.msra.mxu2 %v364_v46  ;;  %v399_v9 = vld [vmem:[#allocation3 + $0x90] sm:$0xf]  ;;  %v412_v10 = vor.u32 %v473_v2, %v409_v3  ;;  %v472_v11 = vld [vmem:[#allocation3 + $0x94] sm:$0xf0]  ;;  %v455_v12 = vld [vmem:[#allocation3 + $0x14] sm:$0xf]  ;;  %v336_v16 = vor.u32 %v456_v8, %v335_v7 }
  0x18   :  { %287 = vmatpush.bf16.msra.mxu3 %v428_v50  ;;  %v337_v13 = vld [vmem:[#allocation3 + $0x18] sm:$0xf0]  ;;  %v471_v14 = vld [vmem:[#allocation3 + $0x94] sm:$0xf]  ;;  %v45_v17 = vld [vmem:[%s577_s0] sm:$0xff]  ;;  %v400_v18 = vor.u32 %v472_v11, %v399_v9  ;;  %s544_s21 = smov [#allocation6]  }
  0x19   :  { %249 = vmatpush.bf16.msra.mxu0 %v352_v56  ;;  %v401_v15 = vld [vmem:[#allocation3 + $0x98] sm:$0xf0]  ;;  %v340_v19 = vor.u32 %v455_v12, %v337_v13  ;;  %v327_v20 = vld [vmem:[#allocation3] sm:$0xf]  ;;  %v454_v21 = vld [vmem:[#allocation3 + $0x4] sm:$0xf0]  ;;  %v79_v29 = vunpack.c.l.b16 %v45_v17  ;;  %v80_v31 = vunpack.c.h.b16 %v45_v17 }
  0x1a   :  { %262 = vmatpush.bf16.msra.mxu1 %v416_v57  ;;  %v391_v22 = vld [vmem:[#allocation3 + $0x80] sm:$0xf]  ;;  %v404_v23 = vor.u32 %v471_v14, %v401_v15  ;;  %v470_v24 = vld [vmem:[#allocation3 + $0x84] sm:$0xf0]  ;;  %v453_v25 = vld [vmem:[#allocation3 + $0x4] sm:$0xf]  ;;  %v328_v30 = vor.u32 %v454_v21, %v327_v20 }
  0x1b   :  { %275 = vmatpush.bf16.msra.mxu2 %v356_v58  ;;  %v329_v26 = vld [vmem:[#allocation3 + $0x8] sm:$0xf0]  ;;  %v469_v27 = vld [vmem:[#allocation3 + $0x84] sm:$0xf]  ;;  %v392_v32 = vor.u32 %v470_v24, %v391_v22  ;;  %v81_v35 = vpack.c.b16 %v79_v29, %v79_v29  ;;  %v82_v36 = vpack.c.b16 %v80_v31, %v80_v31  ;;  %v35_v37 = vld [vmem:[%s579_s2] sm:$0x3] }
  0x1c   :  { %288 = vmatpush.bf16.msra.mxu3 %v420_v62  ;;  %v393_v28 = vld [vmem:[#allocation3 + $0x88] sm:$0xf0]  ;;  %v332_v33 = vor.u32 %v453_v25, %v329_v26  ;;  %v37_v39 = vperm.slane %v35_v37, 0  ;;  %v38_v44 = vperm.slane %v35_v37, 1  ;;  %s313_s22 = sshll.u32 %s544_s21, 4  ;;  %s315_s25 = sshll.u32 %s580_s3, 4  ;;  %s314_s22 = int_to_ptr.vmem [resolvable:$true] %s313_s22  ;;  %s316_s25 = int_to_ptr.hbm [resolvable:$true] %s315_s25 }
  0x1d   :  { %250 = vmatpush.bf16.msra.mxu0 %v344_v4  ;;  %v396_v34 = vor.u32 %v469_v27, %v393_v28 }
  0x1e   :  { %263 = vmatpush.bf16.msra.mxu1 %v408_v5 }
  0x1f   :  { %276 = vmatpush.bf16.msra.mxu2 %v348_v6 }
  0x20   :  { %289 = vmatpush.bf16.msra.mxu3 %v412_v10 }
  0x21   :  { %251 = vmatpush.bf16.msra.mxu0 %v336_v16 }
  0x22   :  { %264 = vmatpush.bf16.msra.mxu1 %v400_v18 }
  0x23   :  { %277 = vmatpush.bf16.msra.mxu2 %v340_v19 }
  0x24   :  { %290 = vmatpush.bf16.msra.mxu3 %v404_v23 }
  0x25   :  { %252 = vmatpush.bf16.msra.mxu0 %v328_v30 }
  0x26   :  { %265 = vmatpush.bf16.msra.mxu1 %v392_v32 }
  0x27   :  { %278 = vmatpush.bf16.msra.mxu2 %v332_v33 }
  0x28   :  { %291 = vmatpush.bf16.msra.mxu3 %v396_v34  ;;  %253 = vmatmul.bf16.vlgmr.msra.gmra.mxu0 %v81_v35 }
  0x29   :  { %266 = vmatmul.bf16.vlgmr.msra.gmra.mxu1 %v82_v36 }
  0x2a   :  { %279 = vmatmul.bf16.vlgmr.msra.gmra.mxu2 %v81_v35 }
  0x2b   :  { %292 = vmatmul.bf16.vlgmr.msra.gmra.mxu3 %v82_v36 }
  0xa5   :  { %v254_v38 = vpop.f32.mrf.mxu0 }
  0xa6   :  { %v267_v40 = vpop.f32.mrf.mxu1 }
  0xa7   :  { %v268_v41 = vadd.f32 %v267_v40, %v254_v38 }
  0xa9   :  { %v297_v42 = vadd.f32 %v268_v41, %v37_v39 }
  0xab   :  { %306 = vst [vmem:[#allocation6] sm:$0xff] %v297_v42 }
  0xad   :  { %v280_v43 = vpop.f32.mrf.mxu2  ;;  %v256_v46 = vpop.f32.mrf.mxu0 }
  0xae   :  { %v293_v45 = vpop.f32.mrf.mxu3  ;;  %v269_v48 = vpop.f32.mrf.mxu1 }
  0xaf   :  { %v294_v47 = vadd.f32 %v293_v45, %v280_v43 }
  0xb1   :  { %v298_v49 = vadd.f32 %v294_v47, %v38_v44 }
  0xb3   :  { %307 = vst [vmem:[#allocation6 + $0x8] sm:$0xff] %v298_v49 }
  0xb4   :  { %318 = dma.vmem_to_hbm [thread:$0]  %s314_s22, 256, %s316_s25, [#allocation5]  }
  0xb5   :  { %v282_v50 = vpop.f32.mrf.mxu2 }
  0xb6   :  { %v295_v51 = vpop.f32.mrf.mxu3 }
  0xb7   :  { %539 = dma.done.wait [#allocation5], 256  }
  0xb8   :  { %540 = vsyncadd [#allocation5], 4294967040 }
  0xb9   :  { %323 = vsyncpa [#allocation4], 1 }
  0xba   :  { %324 = vsyncpa [#allocation5], 1 }

</bundles_post_ra>
